<compile_context>
chip_gen: v6e
topology: v6e:2x2x1
jax: 0.10.0
libtpu: 0.0.40
codegen_flags: <defaults>
</compile_context>

<pallas_src>
import functools

import jax
import jax.numpy as jnp
from jax.experimental import pallas as pl
from jax.experimental.pallas import tpu as pltpu


def _round_up(n, m):
    return ((n + m - 1) // m) * m


def _mlp_kernel(x_ref, w_in_ref, b_in_ref, w_h_ref, b_h_ref, w_out_ref, b_out_ref,
                o_ref, h_ref, *, n_layer):
    """Fused MLP forward for one batch tile, entirely on-chip.

    Matmuls run in the weights' dtype (f32 or bf16) with f32 MXU accumulation.
    Bias-add / ReLU stay f32.  The same hidden weight block is applied
    n_layer times, matching the PyTorch module.
    """
    cdt = w_in_ref.dtype  # matmul operand dtype (f32 or bf16)

    # Input layer: x @ W_in + b_in, ReLU.
    h0 = jnp.dot(x_ref[...], w_in_ref[...], preferred_element_type=jnp.float32)
    h_ref[...] = jnp.maximum(h0 + b_in_ref[...], 0.0)

    def hidden_layer():
        hh = jnp.dot(h_ref[...].astype(cdt), w_h_ref[...],
                     preferred_element_type=jnp.float32)
        h_ref[...] = jnp.maximum(hh + b_h_ref[...], 0.0)

    if n_layer <= 8:
        # Short fixed trip count: static unroll keeps the whole chain visible
        # to the scheduler; the shared weight ref bounds live ranges.
        for _ in range(n_layer):
            hidden_layer()
    else:
        def body(_, carry):
            hidden_layer()
            return carry
        jax.lax.fori_loop(0, n_layer, body, 0)

    # Output layer (lane-dense padded O; real column sliced out by the wrapper).
    o = jnp.dot(h_ref[...].astype(cdt), w_out_ref[...],
                preferred_element_type=jnp.float32)
    o_ref[...] = o + b_out_ref[...]


def net_forward(x, params, n_layer, *, batch_tile=None, matmul_dtype=jnp.float32):
    """Pallas TPU forward pass of Net.

    x: (B, n_feature) float32
    params: w_in (F,H), b_in (1,H), w_h (H,H), b_h (1,H), w_out (H,O), b_out (1,O)
    matmul_dtype: jnp.float32 (v5e-safe) or jnp.bfloat16 (v6e/v7x MXU-native).
    """
    B, F = x.shape
    H = params["w_in"].shape[1]
    O = params["w_out"].shape[1]

    # ---- pad to vreg / MXU friendly shapes ----------------------------------
    F_pad = _round_up(F, 128)
    H_pad = _round_up(H, 128)
    O_pad = _round_up(O, 128)          # lane-dense output (avoids masked vst)

    if batch_tile is None:
        # Whole batch in one tile when small; cap so the activation scratch and
        # per-tile I/O blocks stay a modest slice of VMEM even for large H.
        cap = 512
        # Keep batch_tile * (F_pad + H_pad + O_pad) * 4 bytes under ~8 MiB.
        row_bytes = (F_pad + H_pad + O_pad) * 4
        cap = max(8, min(cap, (8 * 1024 * 1024) // max(row_bytes, 1)))
        batch_tile = min(_round_up(B, 8), _round_up(cap, 8))
    batch_tile = max(8, _round_up(batch_tile, 8))
    B_pad = _round_up(B, batch_tile)

    wdt = jnp.dtype(matmul_dtype)

    def pad2(a, r, c, dtype):
        a = a.astype(dtype)
        return jnp.pad(a, ((0, r - a.shape[0]), (0, c - a.shape[1])))

    # Zero padding is exact: padded input columns / hidden units contribute 0
    # through every Linear+ReLU, and padded output columns are sliced away.
    x_p   = pad2(x,                B_pad, F_pad, wdt)
    w_in  = pad2(params["w_in"],   F_pad, H_pad, wdt)
    w_h   = pad2(params["w_h"],    H_pad, H_pad, wdt)
    w_out = pad2(params["w_out"],  H_pad, O_pad, wdt)
    b_in  = pad2(params["b_in"],   1,     H_pad, jnp.float32)
    b_h   = pad2(params["b_h"],    1,     H_pad, jnp.float32)
    b_out = pad2(params["b_out"],  1,     O_pad, jnp.float32)

    grid = (B_pad // batch_tile,)

    def wspec(shape):
        # Grid-invariant blocks: constant index_map -> fetched once, resident.
        return pl.BlockSpec(shape, lambda i: (0, 0))

    # VMEM budget: default double-buffering of every pipelined block + scratch.
    est = 2 * (batch_tile * F_pad * wdt.itemsize
               + F_pad * H_pad * wdt.itemsize
               + H_pad * H_pad * wdt.itemsize
               + H_pad * O_pad * wdt.itemsize
               + (2 * H_pad + O_pad) * 4
               + batch_tile * O_pad * 4) + batch_tile * H_pad * 4
    vmem_limit = int(min(max(2 * est, 32 * 1024 * 1024), 64 * 1024 * 1024))

    # Advisory cost hint for XLA's scheduler around the custom call.
    flops = 2 * B_pad * (F_pad * H_pad + n_layer * H_pad * H_pad + H_pad * O_pad)
    bytes_accessed = (x_p.size * wdt.itemsize
                      + (w_in.size + w_h.size + w_out.size) * wdt.itemsize
                      + (b_in.size + b_h.size + b_out.size) * 4
                      + B_pad * O_pad * 4)
    cost = pl.CostEstimate(flops=flops, transcendentals=0,
                           bytes_accessed=bytes_accessed)

    kernel = functools.partial(_mlp_kernel, n_layer=n_layer)

    out_p = pl.pallas_call(
        kernel,
        out_shape=jax.ShapeDtypeStruct((B_pad, O_pad), jnp.float32),
        grid_spec=pltpu.PrefetchScalarGridSpec(
            num_scalar_prefetch=0,
            grid=grid,
            in_specs=[
                pl.BlockSpec((batch_tile, F_pad), lambda i: (i, 0)),  # x tile
                wspec((F_pad, H_pad)),   # w_in
                wspec((1, H_pad)),       # b_in
                wspec((H_pad, H_pad)),   # w_h (shared across the n_layer loop)
                wspec((1, H_pad)),       # b_h
                wspec((H_pad, O_pad)),   # w_out
                wspec((1, O_pad)),       # b_out
            ],
            out_specs=pl.BlockSpec((batch_tile, O_pad), lambda i: (i, 0)),
            scratch_shapes=[pltpu.VMEM((batch_tile, H_pad), jnp.float32)],
        ),
        compiler_params=pltpu.CompilerParams(
            dimension_semantics=("parallel",),
            vmem_limit_bytes=vmem_limit),
        cost_estimate=cost,
    )(x_p, w_in, b_in, w_h, b_h, w_out, b_out)

    return out_p[:B, :O]


def init_params(key, n_feature, n_hidden, n_output):
    """Deterministic synthetic init (PyTorch nn.Linear-style uniform bounds)."""
    ks = jax.random.split(key, 6)

    def uniform(k, shape, fan_in):
        bound = 1.0 / jnp.sqrt(fan_in)
        return jax.random.uniform(k, shape, jnp.float32, -bound, bound)

    return {
        "w_in": uniform(ks[0], (n_feature, n_hidden), n_feature),
        "b_in": uniform(ks[1], (1, n_hidden), n_feature),
        "w_h": uniform(ks[2], (n_hidden, n_hidden), n_hidden),
        "b_h": uniform(ks[3], (1, n_hidden), n_hidden),
        "w_out": uniform(ks[4], (n_hidden, n_output), n_hidden),
        "b_out": uniform(ks[5], (1, n_output), n_hidden),
    }


def net_forward_ref(x, params, n_layer, matmul_dtype=jnp.float32):
    """Pure-JAX reference with matching matmul operand dtype."""
    def mm(a, w):
        return jnp.dot(a.astype(matmul_dtype), w.astype(matmul_dtype),
                       preferred_element_type=jnp.float32)
    h = jnp.maximum(mm(x, params["w_in"]) + params["b_in"], 0.0)
    for _ in range(n_layer):
        h = jnp.maximum(mm(h, params["w_h"]) + params["b_h"], 0.0)
    return mm(h, params["w_out"]) + params["b_out"]


if __name__ == "__main__":
    n_feature, n_hidden, n_output = 4, 32, 1
    batch = 16

    key = jax.random.PRNGKey(0)
    k_x, k_p = jax.random.split(key)
    x = jax.random.normal(k_x, (batch, n_feature), jnp.float32)
    params = init_params(k_p, n_feature, n_hidden, n_output)

    # f32 matmuls (v5e-safe path); n_layer=3 exercises the static-unroll branch.
    out = jax.block_until_ready(net_forward(x, params, n_layer=3))
    ref = net_forward_ref(x, params, n_layer=3)
    assert out.shape == (batch, n_output)
    assert jnp.allclose(out, ref, atol=1e-5, rtol=1e-5), "f32 mismatch vs reference"

    # bf16 matmul operands (v6e/v7x MXU-native), f32 accumulation; n_layer=12
    # exercises the fori_loop branch. Checked against a bf16-consistent reference.
    out_bf = jax.block_until_ready(
        net_forward(x, params, n_layer=12, matmul_dtype=jnp.bfloat16))
    ref_bf = net_forward_ref(x, params, n_layer=12, matmul_dtype=jnp.bfloat16)
    assert out_bf.shape == (batch, n_output)
    assert jnp.allclose(out_bf, ref_bf, atol=5e-2, rtol=5e-2), "bf16 mismatch vs reference"

    print("KERNEL_OK")
</pallas_src>

<mosaic_0001>
module attributes {stable_mosaic.version = 11 : i64} {
  func.func @_mlp_kernel(%arg0: i32, %arg1: memref<16x128xf32, #tpu.memory_space<vmem>>, %arg2: memref<128x128xf32, #tpu.memory_space<vmem>>, %arg3: memref<1x128xf32, #tpu.memory_space<vmem>>, %arg4: memref<128x128xf32, #tpu.memory_space<vmem>>, %arg5: memref<1x128xf32, #tpu.memory_space<vmem>>, %arg6: memref<128x128xf32, #tpu.memory_space<vmem>>, %arg7: memref<1x128xf32, #tpu.memory_space<vmem>>, %arg8: memref<16x128xf32, #tpu.memory_space<vmem>>, %arg9: memref<16x128xf32, #tpu.memory_space<vmem>>) attributes {dimension_semantics = [#tpu.dimension_semantics<parallel>], iteration_bounds = array<i64: 1>, scalar_prefetch = 0 : i64, scratch_operands = 1 : i64, tpu.core_type = #tpu.core_type<tc>, window_params = [{transform_indices = @transform_0, window_bounds = array<i64: 16, 128>}, {pipeline_mode = #tpu.pipeline_mode<synchronous>, transform_indices = @transform_1, window_bounds = array<i64: 128, 128>}, {pipeline_mode = #tpu.pipeline_mode<synchronous>, transform_indices = @transform_2, window_bounds = array<i64: 1, 128>}, {pipeline_mode = #tpu.pipeline_mode<synchronous>, transform_indices = @transform_3, window_bounds = array<i64: 128, 128>}, {pipeline_mode = #tpu.pipeline_mode<synchronous>, transform_indices = @transform_4, window_bounds = array<i64: 1, 128>}, {pipeline_mode = #tpu.pipeline_mode<synchronous>, transform_indices = @transform_5, window_bounds = array<i64: 128, 128>}, {pipeline_mode = #tpu.pipeline_mode<synchronous>, transform_indices = @transform_6, window_bounds = array<i64: 1, 128>}, {transform_indices = @transform_7, window_bounds = array<i64: 16, 128>}]} {
    %c0 = arith.constant 0 : index
    %c0_0 = arith.constant 0 : index
    %0 = vector.load %arg1[%c0, %c0_0] : memref<16x128xf32, #tpu.memory_space<vmem>>, vector<16x128xf32>
    %c0_1 = arith.constant 0 : index
    %c0_2 = arith.constant 0 : index
    %1 = vector.load %arg2[%c0_1, %c0_2] : memref<128x128xf32, #tpu.memory_space<vmem>>, vector<128x128xf32>
    %cst = arith.constant dense<0.000000e+00> : vector<16x128xf32>
    %2 = tpu.matmul %0, %1, %cst {dimension_numbers = #tpu.dot_dimension_numbers<[1], [0], [0], [1], [0, 0, 1, 1], [], []>} : vector<16x128xf32>, vector<128x128xf32>, vector<16x128xf32> -> vector<16x128xf32>
    %c0_3 = arith.constant 0 : index
    %c0_4 = arith.constant 0 : index
    %3 = vector.load %arg3[%c0_3, %c0_4] : memref<1x128xf32, #tpu.memory_space<vmem>>, vector<1x128xf32>
    %4 = vector.broadcast %3 : vector<1x128xf32> to vector<16x128xf32>
    %5 = arith.addf %2, %4 : vector<16x128xf32>
    %cst_5 = arith.constant 0.000000e+00 : f32
    %6 = vector.broadcast %cst_5 : f32 to vector<16x128xf32>
    %7 = arith.maximumf %5, %6 : vector<16x128xf32>
    %c0_6 = arith.constant 0 : index
    %c0_7 = arith.constant 0 : index
    %8 = vector.load %arg9[%c0_6, %c0_7] : memref<16x128xf32, #tpu.memory_space<vmem>>, vector<16x128xf32>
    tpu.vector_store %arg9[%c0_6, %c0_7], %7 {strides = array<i32>} : memref<16x128xf32, #tpu.memory_space<vmem>>, vector<16x128xf32>,
    %c0_8 = arith.constant 0 : index
    %c0_9 = arith.constant 0 : index
    %9 = vector.load %arg9[%c0_8, %c0_9] : memref<16x128xf32, #tpu.memory_space<vmem>>, vector<16x128xf32>
    %c0_10 = arith.constant 0 : index
    %c0_11 = arith.constant 0 : index
    %10 = vector.load %arg4[%c0_10, %c0_11] : memref<128x128xf32, #tpu.memory_space<vmem>>, vector<128x128xf32>
    %cst_12 = arith.constant dense<0.000000e+00> : vector<16x128xf32>
    %11 = tpu.matmul %9, %10, %cst_12 {dimension_numbers = #tpu.dot_dimension_numbers<[1], [0], [0], [1], [0, 0, 1, 1], [], []>} : vector<16x128xf32>, vector<128x128xf32>, vector<16x128xf32> -> vector<16x128xf32>
    %c0_13 = arith.constant 0 : index
    %c0_14 = arith.constant 0 : index
    %12 = vector.load %arg5[%c0_13, %c0_14] : memref<1x128xf32, #tpu.memory_space<vmem>>, vector<1x128xf32>
    %13 = vector.broadcast %12 : vector<1x128xf32> to vector<16x128xf32>
    %14 = arith.addf %11, %13 : vector<16x128xf32>
    %cst_15 = arith.constant 0.000000e+00 : f32
    %15 = vector.broadcast %cst_15 : f32 to vector<16x128xf32>
    %16 = arith.maximumf %14, %15 : vector<16x128xf32>
    %c0_16 = arith.constant 0 : index
    %c0_17 = arith.constant 0 : index
    %17 = vector.load %arg9[%c0_16, %c0_17] : memref<16x128xf32, #tpu.memory_space<vmem>>, vector<16x128xf32>
    tpu.vector_store %arg9[%c0_16, %c0_17], %16 {strides = array<i32>} : memref<16x128xf32, #tpu.memory_space<vmem>>, vector<16x128xf32>,
    %c0_18 = arith.constant 0 : index
    %c0_19 = arith.constant 0 : index
    %18 = vector.load %arg9[%c0_18, %c0_19] : memref<16x128xf32, #tpu.memory_space<vmem>>, vector<16x128xf32>
    %c0_20 = arith.constant 0 : index
    %c0_21 = arith.constant 0 : index
    %19 = vector.load %arg4[%c0_20, %c0_21] : memref<128x128xf32, #tpu.memory_space<vmem>>, vector<128x128xf32>
    %cst_22 = arith.constant dense<0.000000e+00> : vector<16x128xf32>
    %20 = tpu.matmul %18, %19, %cst_22 {dimension_numbers = #tpu.dot_dimension_numbers<[1], [0], [0], [1], [0, 0, 1, 1], [], []>} : vector<16x128xf32>, vector<128x128xf32>, vector<16x128xf32> -> vector<16x128xf32>
    %c0_23 = arith.constant 0 : index
    %c0_24 = arith.constant 0 : index
    %21 = vector.load %arg5[%c0_23, %c0_24] : memref<1x128xf32, #tpu.memory_space<vmem>>, vector<1x128xf32>
    %22 = vector.broadcast %21 : vector<1x128xf32> to vector<16x128xf32>
    %23 = arith.addf %20, %22 : vector<16x128xf32>
    %cst_25 = arith.constant 0.000000e+00 : f32
    %24 = vector.broadcast %cst_25 : f32 to vector<16x128xf32>
    %25 = arith.maximumf %23, %24 : vector<16x128xf32>
    %c0_26 = arith.constant 0 : index
    %c0_27 = arith.constant 0 : index
    %26 = vector.load %arg9[%c0_26, %c0_27] : memref<16x128xf32, #tpu.memory_space<vmem>>, vector<16x128xf32>
    tpu.vector_store %arg9[%c0_26, %c0_27], %25 {strides = array<i32>} : memref<16x128xf32, #tpu.memory_space<vmem>>, vector<16x128xf32>,
    %c0_28 = arith.constant 0 : index
    %c0_29 = arith.constant 0 : index
    %27 = vector.load %arg9[%c0_28, %c0_29] : memref<16x128xf32, #tpu.memory_space<vmem>>, vector<16x128xf32>
    %c0_30 = arith.constant 0 : index
    %c0_31 = arith.constant 0 : index
    %28 = vector.load %arg4[%c0_30, %c0_31] : memref<128x128xf32, #tpu.memory_space<vmem>>, vector<128x128xf32>
    %cst_32 = arith.constant dense<0.000000e+00> : vector<16x128xf32>
    %29 = tpu.matmul %27, %28, %cst_32 {dimension_numbers = #tpu.dot_dimension_numbers<[1], [0], [0], [1], [0, 0, 1, 1], [], []>} : vector<16x128xf32>, vector<128x128xf32>, vector<16x128xf32> -> vector<16x128xf32>
    %c0_33 = arith.constant 0 : index
    %c0_34 = arith.constant 0 : index
    %30 = vector.load %arg5[%c0_33, %c0_34] : memref<1x128xf32, #tpu.memory_space<vmem>>, vector<1x128xf32>
    %31 = vector.broadcast %30 : vector<1x128xf32> to vector<16x128xf32>
    %32 = arith.addf %29, %31 : vector<16x128xf32>
    %cst_35 = arith.constant 0.000000e+00 : f32
    %33 = vector.broadcast %cst_35 : f32 to vector<16x128xf32>
    %34 = arith.maximumf %32, %33 : vector<16x128xf32>
    %c0_36 = arith.constant 0 : index
    %c0_37 = arith.constant 0 : index
    %35 = vector.load %arg9[%c0_36, %c0_37] : memref<16x128xf32, #tpu.memory_space<vmem>>, vector<16x128xf32>
    tpu.vector_store %arg9[%c0_36, %c0_37], %34 {strides = array<i32>} : memref<16x128xf32, #tpu.memory_space<vmem>>, vector<16x128xf32>,
    %c0_38 = arith.constant 0 : index
    %c0_39 = arith.constant 0 : index
    %36 = vector.load %arg9[%c0_38, %c0_39] : memref<16x128xf32, #tpu.memory_space<vmem>>, vector<16x128xf32>
    %c0_40 = arith.constant 0 : index
    %c0_41 = arith.constant 0 : index
    %37 = vector.load %arg6[%c0_40, %c0_41] : memref<128x128xf32, #tpu.memory_space<vmem>>, vector<128x128xf32>
    %cst_42 = arith.constant dense<0.000000e+00> : vector<16x128xf32>
    %38 = tpu.matmul %36, %37, %cst_42 {dimension_numbers = #tpu.dot_dimension_numbers<[1], [0], [0], [1], [0, 0, 1, 1], [], []>} : vector<16x128xf32>, vector<128x128xf32>, vector<16x128xf32> -> vector<16x128xf32>
    %c0_43 = arith.constant 0 : index
    %c0_44 = arith.constant 0 : index
    %39 = vector.load %arg7[%c0_43, %c0_44] : memref<1x128xf32, #tpu.memory_space<vmem>>, vector<1x128xf32>
    %40 = vector.broadcast %39 : vector<1x128xf32> to vector<16x128xf32>
    %41 = arith.addf %38, %40 : vector<16x128xf32>
    %c0_45 = arith.constant 0 : index
    %c0_46 = arith.constant 0 : index
    %42 = vector.load %arg8[%c0_45, %c0_46] : memref<16x128xf32, #tpu.memory_space<vmem>>, vector<16x128xf32>
    tpu.vector_store %arg8[%c0_45, %c0_46], %41 {strides = array<i32>} : memref<16x128xf32, #tpu.memory_space<vmem>>, vector<16x128xf32>,
    return
  }
  func.func @transform_0(%arg0: i32) -> (i32, i32) {
    %c0_i32 = arith.constant 0 : i32
    %c0_i32_0 = arith.constant 0 : i32
    return %arg0, %c0_i32 : i32, i32
  }
  func.func @transform_1(%arg0: i32) -> (i32, i32) {
    %c0_i32 = arith.constant 0 : i32
    %c0_i32_0 = arith.constant 0 : i32
    %c0_i32_1 = arith.constant 0 : i32
    return %c0_i32, %c0_i32_0 : i32, i32
  }
  func.func @transform_2(%arg0: i32) -> (i32, i32) {
    %c0_i32 = arith.constant 0 : i32
    %c0_i32_0 = arith.constant 0 : i32
    %c0_i32_1 = arith.constant 0 : i32
    return %c0_i32, %c0_i32_0 : i32, i32
  }
  func.func @transform_3(%arg0: i32) -> (i32, i32) {
    %c0_i32 = arith.constant 0 : i32
    %c0_i32_0 = arith.constant 0 : i32
    %c0_i32_1 = arith.constant 0 : i32
    return %c0_i32, %c0_i32_0 : i32, i32
  }
  func.func @transform_4(%arg0: i32) -> (i32, i32) {
    %c0_i32 = arith.constant 0 : i32
    %c0_i32_0 = arith.constant 0 : i32
    %c0_i32_1 = arith.constant 0 : i32
    return %c0_i32, %c0_i32_0 : i32, i32
  }
  func.func @transform_5(%arg0: i32) -> (i32, i32) {
    %c0_i32 = arith.constant 0 : i32
    %c0_i32_0 = arith.constant 0 : i32
    %c0_i32_1 = arith.constant 0 : i32
    return %c0_i32, %c0_i32_0 : i32, i32
  }
  func.func @transform_6(%arg0: i32) -> (i32, i32) {
    %c0_i32 = arith.constant 0 : i32
    %c0_i32_0 = arith.constant 0 : i32
    %c0_i32_1 = arith.constant 0 : i32
    return %c0_i32, %c0_i32_0 : i32, i32
  }
  func.func @transform_7(%arg0: i32) -> (i32, i32) {
    %c0_i32 = arith.constant 0 : i32
    %c0_i32_0 = arith.constant 0 : i32
    return %arg0, %c0_i32 : i32, i32
  }
}

</mosaic_0001>

<bundles_post_ra>
// kernel: tpu_custom_call.1
= control target key start
LH: loop header
LB: loop body
LE: loop exit
PB: predicated region body
PF: predicated region fallthrough
CT: control target
= control target key end

     0   :  { %12 = vsyncpa [#allocation4], 0  ;;  %s1194_s0 = inlined_call_operand.hbm [shape: f32[16,128], index: 0, kind: input, shape index: {}]   ;;  %s1195_s1 = inlined_call_operand.hbm [shape: f32[128,128], index: 1, kind: input, shape index: {}]   ;;  %s1196_s2 = inlined_call_operand.vmem [shape: f32[1,128], index: 2, kind: input, shape index: {}]   ;;  %s1197_s3 = inlined_call_operand.hbm [shape: f32[128,128], index: 3, kind: input, shape index: {}]   ;;  %s1198_s4 = inlined_call_operand.vmem [shape: f32[1,128], index: 4, kind: input, shape index: {}]   ;;  %s1199_s5 = inlined_call_operand.hbm [shape: f32[128,128], index: 5, kind: input, shape index: {}]   ;;  %s1200_s6 = inlined_call_operand.vmem [shape: f32[1,128], index: 6, kind: input, shape index: {}]   ;;  %s1201_s7 = inlined_call_operand.hbm [shape: f32[16,128], index: 7, kind: output, shape index: {}]  }
   0x1   :  { %13 = vsyncpa [#allocation7], 0 }
   0x2   :  { %14 = vsyncpa [#allocation10], 0 }
   0x3   :  { %15 = vsyncpa [#allocation5], 0  ;;  %s1004_s24 = smov [#allocation6]   ;;  %s1005_s26 = smov [#allocation3]  }
   0x4   :  { %s33_s25 = sshll.u32 %s1004_s24, 4  ;;  %s21_s27 = sshll.u32 %s1005_s26, 4  ;;  %s34_s25 = int_to_ptr.vmem [resolvable:$true] %s33_s25  ;;  %s22_s27 = int_to_ptr.vmem [resolvable:$true] %s21_s27 }
   0x5   :  { %s904_s28 = scalar_lea.vmem %s34_s25, 2048  ;;  %p909_p1 = scmp.lt.s32.totalorder %s34_s25, %s34_s25 }
   0x6   :  { %p905_p0 = scmp.ne.s32.totalorder %s34_s25, %s904_s28  ;;  %p910_p2 = scmp.lt.s32.totalorder %s904_s28, %s904_s28 }
   0x8   :  { %p911_p3 = por %p910_p2, %p909_p1 }
   0xa   :  { %p912_p4 = pnand %p911_p3, %p905_p0 }
   0xc   :  { %915 = shalt.err (!%p912_p4)
}
   0xd   :  { %s1006_s29 = smov 128   ;;  %s1007_s30 = smov 8  }
   0xe   :  { %39 = dma.hbm_to_vmem [thread:$0]  %s1195_s1, 2048, %s34_s25, [#allocation7], %s1006_s29, %s1006_s29, %s1007_s30  }
   0xf   :  { %s924_s10 = scalar_lea.vmem %s22_s27, 256  ;;  %p929_p6 = scmp.lt.s32.totalorder %s22_s27, %s22_s27 }
  0x10   :  { %p925_p5 = scmp.ne.s32.totalorder %s22_s27, %s924_s10  ;;  %p930_p7 = scmp.lt.s32.totalorder %s924_s10, %s924_s10 }
  0x12   :  { %p931_p8 = por %p930_p7, %p929_p6 }
  0x14   :  { %p932_p9 = pnand %p931_p8, %p925_p5 }
  0x16   :  { %935 = shalt.err (!%p932_p9)
}
  0x17   :  { %27 = dma.hbm_to_vmem [thread:$0]  %s1194_s0, 256, %s22_s27, [#allocation4], %s1006_s29, %s1006_s29, %s1007_s30  }
  0x18   :  { %s1008_s13 = smov [#allocation8]   ;;  %s1009_s15 = smov [#allocation9]  }
  0x19   :  { %s47_s14 = sshll.u32 %s1008_s13, 4  ;;  %s61_s16 = sshll.u32 %s1009_s15, 4  ;;  %s48_s14 = int_to_ptr.vmem [resolvable:$true] %s47_s14  ;;  %s62_s16 = int_to_ptr.vmem [resolvable:$true] %s61_s16 }
  0x1a   :  { %s944_s1 = scalar_lea.vmem %s48_s14, 2048  ;;  %p949_p11 = scmp.lt.s32.totalorder %s48_s14, %s48_s14 }
  0x1b   :  { %p945_p10 = scmp.ne.s32.totalorder %s48_s14, %s944_s1  ;;  %p950_p12 = scmp.lt.s32.totalorder %s944_s1, %s944_s1 }
  0x1d   :  { %p951_p13 = por %p950_p12, %p949_p11 }
  0x1f   :  { %p952_p0 = pnand %p951_p13, %p945_p10 }
  0x21   :  { %955 = shalt.err (!%p952_p0)
}
  0x22   :  { %53 = dma.hbm_to_vmem [thread:$0]  %s1197_s3, 2048, %s48_s14, [#allocation7], %s1006_s29, %s1006_s29, %s1007_s30  }
  0x23   :  { %s964_s0 = scalar_lea.vmem %s62_s16, 2048  ;;  %p969_p2 = scmp.lt.s32.totalorder %s62_s16, %s62_s16 }
  0x24   :  { %p965_p1 = scmp.ne.s32.totalorder %s62_s16, %s964_s0  ;;  %p970_p3 = scmp.lt.s32.totalorder %s964_s0, %s964_s0 }
  0x26   :  { %p971_p4 = por %p970_p3, %p969_p2 }
  0x28   :  { %p972_p5 = pnand %p971_p4, %p965_p1 }
  0x2a   :  { %975 = shalt.err (!%p972_p5)
}
  0x2b   :  { %67 = dma.hbm_to_vmem [thread:$0]  %s1199_s5, 2048, %s62_s16, [#allocation10], %s1006_s29, %s1006_s29, %s1007_s30  }
  0x2c   :  { %996 = dma.done.wait [#allocation4], 256  }
  0x2d   :  { %997 = vsyncadd [#allocation4], 4294967040 }
  0x2e   :  { %998 = dma.done.wait [#allocation7], 4096  }
  0x2f   :  { %999 = vsyncadd [#allocation7], 4294963200 }
  0x30   :  { %1000 = dma.done.wait [#allocation10], 2048  }
  0x31   :  { %1001 = vsyncadd [#allocation10], 4294965248  ;;  %v99_v0 = vld [vmem:[#allocation6 + $0x78] sm:$0xff]  ;;  %v98_v1 = vld [vmem:[#allocation6 + $0x70] sm:$0xff]  ;;  %s1010_s23 = smov [#allocation11]  }
  0x32   :  { %714 = vmatprep.subr.mxu0 %v99_v0  ;;  %v97_v2 = vld [vmem:[#allocation6 + $0x68] sm:$0xff]  ;;  %v96_v3 = vld [vmem:[#allocation6 + $0x60] sm:$0xff]  ;;  %v82_v4 = vld [vmem:[#allocation3] sm:$0xff]  ;;  %s605_s24 = sshll.u32 %s1010_s23, 4  ;;  %s606_s24 = int_to_ptr.vmem [resolvable:$true] %s605_s24 }
  0x33   :  { %715 = vmatpush3.msra.mxu0 %v99_v0  ;;  %v95_v5 = vld [vmem:[#allocation6 + $0x58] sm:$0xff]  ;;  %746 = vmatprep.mubr.f32.mxu0 %v82_v4  ;;  %v1077_v7 = vld [vmem:[#allocation8 + $0x70] sm:$0xff]  ;;  %v1081_v9 = vld [vmem:[#allocation8 + $0x68] sm:$0xff]  ;;  %s976_s25 = scalar_lea.vmem %s606_s24, 256  ;;  %p981_p7 = scmp.lt.s32.totalorder %s606_s24, %s606_s24 }
  0x34   :  { %716 = vmatprep.subr.mxu0 %v98_v1  ;;  %v1075_v6 = vld [vmem:[#allocation8 + $0x78] sm:$0xff]  ;;  %v94_v8 = vld [vmem:[#allocation6 + $0x50] sm:$0xff]  ;;  %v93_v10 = vld [vmem:[#allocation6 + $0x48] sm:$0xff]  ;;  %p977_p6 = scmp.ne.s32.totalorder %s606_s24, %s976_s25  ;;  %p982_p8 = scmp.lt.s32.totalorder %s976_s25, %s976_s25 }
  0x35   :  { %717 = vmatpush3.msra.mxu0 %v98_v1  ;;  %749 = vmatprep.subr.mxu1 %v1075_v6  ;;  %v1085_v11 = vld [vmem:[#allocation8 + $0x60] sm:$0xff]  ;;  %v1089_v13 = vld [vmem:[#allocation8 + $0x58] sm:$0xff]  ;;  %v1093_v15 = vld [vmem:[#allocation8 + $0x50] sm:$0xff] }
  0x36   :  { %718 = vmatprep.subr.mxu0 %v97_v2  ;;  %750 = vmatpush3.msra.mxu1 %v1075_v6  ;;  %v92_v12 = vld [vmem:[#allocation6 + $0x40] sm:$0xff]  ;;  %v91_v14 = vld [vmem:[#allocation6 + $0x38] sm:$0xff]  ;;  %v90_v16 = vld [vmem:[#allocation6 + $0x30] sm:$0xff]  ;;  %p983_p9 = por %p982_p8, %p981_p7 }
  0x37   :  { %719 = vmatpush3.msra.mxu0 %v97_v2  ;;  %751 = vmatprep.subr.mxu1 %v1077_v7  ;;  %v1097_v17 = vld [vmem:[#allocation8 + $0x48] sm:$0xff]  ;;  %v1101_v19 = vld [vmem:[#allocation8 + $0x40] sm:$0xff]  ;;  %v1105_v21 = vld [vmem:[#allocation8 + $0x38] sm:$0xff] }
  0x38   :  { %720 = vmatprep.subr.mxu0 %v96_v3  ;;  %752 = vmatpush3.msra.mxu1 %v1077_v7  ;;  %v89_v18 = vld [vmem:[#allocation6 + $0x28] sm:$0xff]  ;;  %v88_v20 = vld [vmem:[#allocation6 + $0x20] sm:$0xff]  ;;  %v87_v22 = vld [vmem:[#allocation6 + $0x18] sm:$0xff]  ;;  %p984_p10 = pnand %p983_p9, %p977_p6 }
  0x39   :  { %721 = vmatpush3.msra.mxu0 %v96_v3  ;;  %753 = vmatprep.subr.mxu1 %v1081_v9  ;;  %v1109_v23 = vld [vmem:[#allocation8 + $0x30] sm:$0xff]  ;;  %v1113_v25 = vld [vmem:[#allocation8 + $0x28] sm:$0xff]  ;;  %v1117_v27 = vld [vmem:[#allocation8 + $0x20] sm:$0xff] }
  0x3a   :  { %722 = vmatprep.subr.mxu0 %v95_v5  ;;  %754 = vmatpush3.msra.mxu1 %v1081_v9  ;;  %v86_v24 = vld [vmem:[#allocation6 + $0x10] sm:$0xff]  ;;  %v85_v26 = vld [vmem:[#allocation6 + $0x8] sm:$0xff]  ;;  %v84_v28 = vld [vmem:[#allocation6] sm:$0xff] }
  0x3b   :  { %723 = vmatpush3.msra.mxu0 %v95_v5  ;;  %755 = vmatprep.subr.mxu1 %v1085_v11  ;;  %v83_v29 = vld [vmem:[#allocation3 + $0x8] sm:$0xff]  ;;  %v190_v31 = vld [vmem:[#allocation8 + $0x10] sm:$0xff]  ;;  %v189_v32 = vld [vmem:[#allocation8 + $0x8] sm:$0xff] }
  0x3c   :  { %724 = vmatprep.subr.mxu0 %v94_v8  ;;  %756 = vmatpush3.msra.mxu1 %v1085_v11  ;;  %v191_v30 = vld [vmem:[#allocation8 + $0x18] sm:$0xff]  ;;  %v188_v33 = vld [vmem:[#allocation8] sm:$0xff]  ;;  %v619_v34 = vld [vmem:[%s1196_s2] ss:$0 sm:$0xff] }
  0x3d   :  { %725 = vmatpush3.msra.mxu0 %v94_v8  ;;  %757 = vmatprep.subr.mxu1 %v1089_v13  ;;  %v1177_v41 = vld [vmem:[%s1198_s4] ss:$0 sm:$0xff]  ;;  %v515_v48 = vld [vmem:[#allocation9 + $0x78] sm:$0xff]  ;;  %v513_v50 = vld [vmem:[#allocation9 + $0x68] sm:$0xff] }
  0x3e   :  { %726 = vmatprep.subr.mxu0 %v93_v10  ;;  %758 = vmatpush3.msra.mxu1 %v1089_v13  ;;  %v514_v49 = vld [vmem:[#allocation9 + $0x70] sm:$0xff]  ;;  %v512_v51 = vld [vmem:[#allocation9 + $0x60] sm:$0xff]  ;;  %v511_v52 = vld [vmem:[#allocation9 + $0x58] sm:$0xff] }
  0x3f   :  { %727 = vmatpush3.msra.mxu0 %v93_v10  ;;  %759 = vmatprep.subr.mxu1 %v1093_v15  ;;  %v510_v53 = vld [vmem:[#allocation9 + $0x50] sm:$0xff]  ;;  %v509_v54 = vld [vmem:[#allocation9 + $0x48] sm:$0xff]  ;;  %v508_v55 = vld [vmem:[#allocation9 + $0x40] sm:$0xff] }
  0x40   :  { %728 = vmatprep.subr.mxu0 %v92_v12  ;;  %760 = vmatpush3.msra.mxu1 %v1093_v15  ;;  %v507_v56 = vld [vmem:[#allocation9 + $0x38] sm:$0xff]  ;;  %v506_v57 = vld [vmem:[#allocation9 + $0x30] sm:$0xff]  ;;  %v505_v58 = vld [vmem:[#allocation9 + $0x28] sm:$0xff] }
  0x41   :  { %729 = vmatpush3.msra.mxu0 %v92_v12  ;;  %761 = vmatprep.subr.mxu1 %v1097_v17  ;;  %v504_v59 = vld [vmem:[#allocation9 + $0x20] sm:$0xff]  ;;  %v503_v2 = vld [vmem:[#allocation9 + $0x18] sm:$0xff]  ;;  %v502_v3 = vld [vmem:[#allocation9 + $0x10] sm:$0xff] }
  0x42   :  { %730 = vmatprep.subr.mxu0 %v91_v14  ;;  %762 = vmatpush3.msra.mxu1 %v1097_v17  ;;  %v501_v4 = vld [vmem:[#allocation9 + $0x8] sm:$0xff]  ;;  %v500_v5 = vld [vmem:[#allocation9] sm:$0xff]  ;;  %v623_v12 = vld [vmem:[%s1200_s6] ss:$0 sm:$0xff] }
  0x43   :  { %731 = vmatpush3.msra.mxu0 %v91_v14  ;;  %763 = vmatprep.subr.mxu1 %v1101_v19 }
  0x44   :  { %732 = vmatprep.subr.mxu0 %v90_v16  ;;  %764 = vmatpush3.msra.mxu1 %v1101_v19 }
  0x45   :  { %733 = vmatpush3.msra.mxu0 %v90_v16  ;;  %765 = vmatprep.subr.mxu1 %v1105_v21 }
  0x46   :  { %734 = vmatprep.subr.mxu0 %v89_v18  ;;  %766 = vmatpush3.msra.mxu1 %v1105_v21 }
  0x47   :  { %735 = vmatpush3.msra.mxu0 %v89_v18  ;;  %767 = vmatprep.subr.mxu1 %v1109_v23 }
  0x48   :  { %736 = vmatprep.subr.mxu0 %v88_v20  ;;  %768 = vmatpush3.msra.mxu1 %v1109_v23 }
  0x49   :  { %737 = vmatpush3.msra.mxu0 %v88_v20  ;;  %769 = vmatprep.subr.mxu1 %v1113_v25 }
  0x4a   :  { %738 = vmatprep.subr.mxu0 %v87_v22  ;;  %770 = vmatpush3.msra.mxu1 %v1113_v25 }
  0x4b   :  { %739 = vmatpush3.msra.mxu0 %v87_v22  ;;  %771 = vmatprep.subr.mxu1 %v1117_v27 }
  0x4c   :  { %740 = vmatprep.subr.mxu0 %v86_v24  ;;  %772 = vmatpush3.msra.mxu1 %v1117_v27 }
  0x4d   :  { %741 = vmatpush3.msra.mxu0 %v86_v24  ;;  %773 = vmatprep.subr.mxu1 %v191_v30 }
  0x4e   :  { %742 = vmatprep.subr.mxu0 %v85_v26  ;;  %774 = vmatpush3.msra.mxu1 %v191_v30 }
  0x4f   :  { %743 = vmatpush3.msra.mxu0 %v85_v26  ;;  %775 = vmatprep.subr.mxu1 %v190_v31 }
  0x50   :  { %744 = vmatprep.subr.mxu0 %v84_v28  ;;  %776 = vmatpush3.msra.mxu1 %v190_v31 }
  0x51   :  { %745 = vmatpush3.msra.mxu0 %v84_v28  ;;  %777 = vmatprep.subr.mxu1 %v189_v32 }
  0x52   :  { %747 = vmatmul.mubr.f32.vlgmr.msra.gmra.mxu0 %v83_v29  ;;  %784 = vmatprep.subr.mxu0 %v1075_v6 }
  0x53   :  { %785 = vmatpush3.msra.mxu0 %v1075_v6  ;;  %778 = vmatpush3.msra.mxu1 %v189_v32 }
  0x54   :  { %786 = vmatprep.subr.mxu0 %v1077_v7  ;;  %779 = vmatprep.subr.mxu1 %v188_v33 }
  0x55   :  { %787 = vmatpush3.msra.mxu0 %v1077_v7  ;;  %780 = vmatpush3.msra.mxu1 %v188_v33 }
  0x56   :  { %788 = vmatprep.subr.mxu0 %v1081_v9  ;;  %819 = vmatprep.subr.mxu1 %v1075_v6 }
  0x57   :  { %789 = vmatpush3.msra.mxu0 %v1081_v9 }
  0x58   :  { %790 = vmatprep.subr.mxu0 %v1085_v11 }
  0x59   :  { %791 = vmatpush3.msra.mxu0 %v1085_v11 }
  0x5a   :  { %792 = vmatprep.subr.mxu0 %v1089_v13 }
  0x5b   :  { %793 = vmatpush3.msra.mxu0 %v1089_v13 }
  0x5c   :  { %794 = vmatprep.subr.mxu0 %v1093_v15 }
  0x5d   :  { %795 = vmatpush3.msra.mxu0 %v1093_v15 }
  0x5e   :  { %796 = vmatprep.subr.mxu0 %v1097_v17 }
  0x5f   :  { %797 = vmatpush3.msra.mxu0 %v1097_v17 }
  0x60   :  { %798 = vmatprep.subr.mxu0 %v1101_v19 }
  0x61   :  { %799 = vmatpush3.msra.mxu0 %v1101_v19 }
  0x62   :  { %800 = vmatprep.subr.mxu0 %v1105_v21 }
  0x63   :  { %801 = vmatpush3.msra.mxu0 %v1105_v21 }
  0x64   :  { %802 = vmatprep.subr.mxu0 %v1109_v23 }
  0x65   :  { %803 = vmatpush3.msra.mxu0 %v1109_v23 }
  0x66   :  { %804 = vmatprep.subr.mxu0 %v1113_v25 }
  0x67   :  { %805 = vmatpush3.msra.mxu0 %v1113_v25 }
  0x68   :  { %806 = vmatprep.subr.mxu0 %v1117_v27 }
  0x69   :  { %807 = vmatpush3.msra.mxu0 %v1117_v27 }
  0x6a   :  { %808 = vmatprep.subr.mxu0 %v191_v30 }
  0x6b   :  { %809 = vmatpush3.msra.mxu0 %v191_v30 }
  0x6c   :  { %810 = vmatprep.subr.mxu0 %v190_v31 }
  0x6d   :  { %811 = vmatpush3.msra.mxu0 %v190_v31 }
  0x6e   :  { %812 = vmatprep.subr.mxu0 %v189_v32 }
  0x6f   :  { %813 = vmatpush3.msra.mxu0 %v189_v32 }
  0x70   :  { %814 = vmatprep.subr.mxu0 %v188_v33 }
  0x71   :  { %815 = vmatpush3.msra.mxu0 %v188_v33 }
  0x72   :  { %854 = vmatprep.subr.mxu0 %v515_v48 }
 0x112   :  { %v748_v35 = vpop.f32.mrf.mxu0 }
 0x113   :  { %v179_v36 = vadd.f32 %v748_v35, %v619_v34 }
 0x114   :  { %v173_v37 = vpop.f32.mrf.mxu0 }
 0x115   :  { %v174_v38 = vadd.f32 %v619_v34, %v173_v37  ;;  %v183_v40 = vmax.f32 %v179_v36, 0.0 }
 0x117   :  { %v182_v39 = vmax.f32 %v174_v38, 0.0 }
 0x119   :  { %781 = vmatprep.mubr.f32.mxu1 %v182_v39 }
 0x11a   :  { %782 = vmatmul.mubr.f32.vlgmr.msra.gmra.mxu1 %v183_v40 }
 0x11b   :  { %820 = vmatpush3.msra.mxu1 %v1075_v6 }
 0x11c   :  { %821 = vmatprep.subr.mxu1 %v1077_v7 }
 0x11d   :  { %822 = vmatpush3.msra.mxu1 %v1077_v7 }
 0x11e   :  { %823 = vmatprep.subr.mxu1 %v1081_v9 }
 0x11f   :  { %824 = vmatpush3.msra.mxu1 %v1081_v9 }
 0x120   :  { %825 = vmatprep.subr.mxu1 %v1085_v11 }
 0x121   :  { %826 = vmatpush3.msra.mxu1 %v1085_v11 }
 0x122   :  { %827 = vmatprep.subr.mxu1 %v1089_v13 }
 0x123   :  { %828 = vmatpush3.msra.mxu1 %v1089_v13 }
 0x124   :  { %829 = vmatprep.subr.mxu1 %v1093_v15 }
 0x125   :  { %830 = vmatpush3.msra.mxu1 %v1093_v15 }
 0x126   :  { %831 = vmatprep.subr.mxu1 %v1097_v17 }
 0x127   :  { %832 = vmatpush3.msra.mxu1 %v1097_v17 }
 0x128   :  { %833 = vmatprep.subr.mxu1 %v1101_v19 }
 0x129   :  { %834 = vmatpush3.msra.mxu1 %v1101_v19 }
 0x12a   :  { %835 = vmatprep.subr.mxu1 %v1105_v21 }
 0x12b   :  { %836 = vmatpush3.msra.mxu1 %v1105_v21 }
 0x12c   :  { %837 = vmatprep.subr.mxu1 %v1109_v23 }
 0x12d   :  { %838 = vmatpush3.msra.mxu1 %v1109_v23 }
 0x12e   :  { %839 = vmatprep.subr.mxu1 %v1113_v25 }
 0x12f   :  { %840 = vmatpush3.msra.mxu1 %v1113_v25 }
 0x130   :  { %841 = vmatprep.subr.mxu1 %v1117_v27 }
 0x131   :  { %842 = vmatpush3.msra.mxu1 %v1117_v27 }
 0x132   :  { %843 = vmatprep.subr.mxu1 %v191_v30 }
 0x133   :  { %844 = vmatpush3.msra.mxu1 %v191_v30 }
 0x134   :  { %845 = vmatprep.subr.mxu1 %v190_v31 }
 0x135   :  { %846 = vmatpush3.msra.mxu1 %v190_v31 }
 0x136   :  { %847 = vmatprep.subr.mxu1 %v189_v32 }
 0x137   :  { %848 = vmatpush3.msra.mxu1 %v189_v32 }
 0x138   :  { %849 = vmatprep.subr.mxu1 %v188_v33 }
 0x139   :  { %850 = vmatpush3.msra.mxu1 %v188_v33 }
 0x1da   :  { %v783_v42 = vpop.f32.mrf.mxu1 }
 0x1db   :  { %v283_v43 = vadd.f32 %v783_v42, %v1177_v41 }
 0x1dc   :  { %v277_v44 = vpop.f32.mrf.mxu1 }
 0x1dd   :  { %v278_v45 = vadd.f32 %v1177_v41, %v277_v44  ;;  %v287_v47 = vmax.f32 %v283_v43, 0.0 }
 0x1df   :  { %v286_v46 = vmax.f32 %v278_v45, 0.0 }
 0x1e1   :  { %816 = vmatprep.mubr.f32.mxu0 %v286_v46 }
 0x1e2   :  { %817 = vmatmul.mubr.f32.vlgmr.msra.gmra.mxu0 %v287_v47 }
 0x1e3   :  { %855 = vmatpush3.msra.mxu0 %v515_v48 }
 0x1e4   :  { %856 = vmatprep.subr.mxu0 %v514_v49 }
 0x1e5   :  { %857 = vmatpush3.msra.mxu0 %v514_v49 }
 0x1e6   :  { %858 = vmatprep.subr.mxu0 %v513_v50 }
 0x1e7   :  { %859 = vmatpush3.msra.mxu0 %v513_v50 }
 0x1e8   :  { %860 = vmatprep.subr.mxu0 %v512_v51 }
 0x1e9   :  { %861 = vmatpush3.msra.mxu0 %v512_v51 }
 0x1ea   :  { %862 = vmatprep.subr.mxu0 %v511_v52 }
 0x1eb   :  { %863 = vmatpush3.msra.mxu0 %v511_v52 }
 0x1ec   :  { %864 = vmatprep.subr.mxu0 %v510_v53 }
 0x1ed   :  { %865 = vmatpush3.msra.mxu0 %v510_v53 }
 0x1ee   :  { %866 = vmatprep.subr.mxu0 %v509_v54 }
 0x1ef   :  { %867 = vmatpush3.msra.mxu0 %v509_v54 }
 0x1f0   :  { %868 = vmatprep.subr.mxu0 %v508_v55 }
 0x1f1   :  { %869 = vmatpush3.msra.mxu0 %v508_v55 }
 0x1f2   :  { %870 = vmatprep.subr.mxu0 %v507_v56 }
 0x1f3   :  { %871 = vmatpush3.msra.mxu0 %v507_v56 }
 0x1f4   :  { %872 = vmatprep.subr.mxu0 %v506_v57 }
 0x1f5   :  { %873 = vmatpush3.msra.mxu0 %v506_v57 }
 0x1f6   :  { %874 = vmatprep.subr.mxu0 %v505_v58 }
 0x1f7   :  { %875 = vmatpush3.msra.mxu0 %v505_v58 }
 0x1f8   :  { %876 = vmatprep.subr.mxu0 %v504_v59 }
 0x1f9   :  { %877 = vmatpush3.msra.mxu0 %v504_v59 }
 0x1fa   :  { %878 = vmatprep.subr.mxu0 %v503_v2 }
 0x1fb   :  { %879 = vmatpush3.msra.mxu0 %v503_v2 }
 0x1fc   :  { %880 = vmatprep.subr.mxu0 %v502_v3 }
 0x1fd   :  { %881 = vmatpush3.msra.mxu0 %v502_v3 }
 0x1fe   :  { %882 = vmatprep.subr.mxu0 %v501_v4 }
 0x1ff   :  { %883 = vmatpush3.msra.mxu0 %v501_v4 }
 0x200   :  { %884 = vmatprep.subr.mxu0 %v500_v5 }
 0x201   :  { %885 = vmatpush3.msra.mxu0 %v500_v5 }
 0x2a2   :  { %v818_v60 = vpop.f32.mrf.mxu0 }
 0x2a3   :  { %v387_v61 = vadd.f32 %v818_v60, %v1177_v41 }
 0x2a4   :  { %v381_v62 = vpop.f32.mrf.mxu0 }
 0x2a5   :  { %v382_v63 = vadd.f32 %v1177_v41, %v381_v62  ;;  %v391_v1 = vmax.f32 %v387_v61, 0.0 }
 0x2a7   :  { %v390_v0 = vmax.f32 %v382_v63, 0.0 }
 0x2a9   :  { %851 = vmatprep.mubr.f32.mxu1 %v390_v0 }
 0x2aa   :  { %852 = vmatmul.mubr.f32.vlgmr.msra.gmra.mxu1 %v391_v1 }
 0x36a   :  { %v853_v6 = vpop.f32.mrf.mxu1 }
 0x36b   :  { %v491_v7 = vadd.f32 %v853_v6, %v1177_v41 }
 0x36c   :  { %v485_v8 = vpop.f32.mrf.mxu1 }
 0x36d   :  { %v486_v9 = vadd.f32 %v1177_v41, %v485_v8  ;;  %v495_v11 = vmax.f32 %v491_v7, 0.0 }
 0x36f   :  { %v494_v10 = vmax.f32 %v486_v9, 0.0 }
 0x371   :  { %886 = vmatprep.mubr.f32.mxu0 %v494_v10 }
 0x372   :  { %887 = vmatmul.mubr.f32.vlgmr.msra.gmra.mxu0 %v495_v11 }
 0x432   :  { %v888_v13 = vpop.f32.mrf.mxu0 }
 0x433   :  { %v595_v14 = vadd.f32 %v888_v13, %v623_v12 }
 0x434   :  { %v589_v15 = vpop.f32.mrf.mxu0 }
 0x435   :  { %599 = vst [vmem:[#allocation11 + $0x8] sm:$0xff] %v595_v14  ;;  %v590_v16 = vadd.f32 %v623_v12, %v589_v15 }
 0x437   :  { %598 = vst [vmem:[#allocation11] sm:$0xff] %v590_v16 }
 0x438   :  { %987 = shalt.err (!%p984_p10)
}
 0x439   :  { %611 = dma.vmem_to_hbm [thread:$0]  %s606_s24, 256, %s1201_s7, [#allocation5], %s1006_s29, %s1006_s29, %s1007_s30  }
 0x43a   :  { %1002 = dma.done.wait [#allocation5], 256  }
 0x43b   :  { %1003 = vsyncadd [#allocation5], 4294967040 }
 0x43c   :  { %615 = vsyncpa [#allocation4], 1 }
 0x43d   :  { %616 = vsyncpa [#allocation7], 1 }
 0x43e   :  { %617 = vsyncpa [#allocation10], 1 }
 0x43f   :  { %618 = vsyncpa [#allocation5], 1 }

</bundles_post_ra>
